<compile_context>
chip_gen: v7x
topology: tpu7x:2x2x1
jax: 0.10.0
libtpu: 0.0.40
codegen_flags: <defaults>
</compile_context>

<pallas_src>
import functools

import jax
import jax.numpy as jnp
from jax import lax
from jax.experimental import pallas as pl
from jax.experimental.pallas import tpu as pltpu


def _emb_kernel(x_ref, pos_ref, seg_ref, o_ref, *, seq_len, ts):
    # x_ref / o_ref / pos_ref: (ts, D)   seg_ref: (2, D)
    s_tile = pl.program_id(0)  # grid = (n_s, B): sequence tile is axis 0

    # Absolute sequence positions covered by this tile, shape (ts, 1).
    pos_idx = s_tile * ts + lax.broadcasted_iota(jnp.int32, (ts, 1), 0)
    is_second_segment = pos_idx > (seq_len // 2)  # (ts, 1) bool

    seg = seg_ref[...]  # read once, reuse
    seg_emb = jnp.where(is_second_segment, seg[1:2, :], seg[0:1, :])  # (ts, D)

    o_ref[...] = x_ref[...] + pos_ref[...] + seg_emb


def _choose_seq_tile(seq_len, d_model, itemsize, target_block_bytes=1 << 20):
    """Bytes-based sequence tile: ~1 MiB per x block, a multiple of the
    sublane pack (8 f32 / 16 bf16 / 32 int8), dividing seq_len.

    Resident VMEM ~ 6 * block_bytes (x/out/pos each double-buffered), which
    keeps the kernel well inside every generation's scoped-VMEM default."""
    pack = max(8, 32 // max(1, itemsize))
    if seq_len % pack != 0:
        return seq_len  # one full-sequence tile (full-dim blocks always legal)
    want = max(pack, target_block_bytes // max(1, d_model * itemsize))
    want = min(want, seq_len)
    best = pack
    for cand in range(pack, want + 1, pack):
        if seq_len % cand == 0:
            best = cand
    return best


@functools.partial(jax.jit, static_argnames=("ts",))
def transformer_embeddings(x, pos_table, seg_table, *, ts=None):
    """x: [B, S, d_model], pos_table: [max_pos_len, d_model],
    seg_table: [type_vocab_size, d_model] -> [B, S, d_model]."""
    B, S, D = x.shape
    elem = jnp.dtype(x.dtype).itemsize
    if ts is None:
        ts = _choose_seq_tile(S, D, elem)
    assert S % ts == 0, "sequence length must be divisible by the seq tile"
    n_s = S // ts

    pack = max(8, 32 // max(1, elem))
    # Pass pos_table untouched (no extra XLA slice op); only slice when the
    # tile isn't sublane-aligned, so the pos block shape stays legal.
    pos = pos_table if (ts % pack == 0) else pos_table[:S]

    # Actual traffic after the grid reorder: x read + out write + pos once +
    # seg once.
    cost = pl.CostEstimate(
        flops=2 * B * S * D,  # two adds/elem
        transcendentals=0,
        bytes_accessed=elem * (2 * B * S * D + S * D + 2 * D),
    )

    kernel = functools.partial(_emb_kernel, seq_len=S, ts=ts)
    out = pl.pallas_call(
        kernel,
        out_shape=jax.ShapeDtypeStruct((B, S, D), x.dtype),
        grid_spec=pltpu.PrefetchScalarGridSpec(
            num_scalar_prefetch=0,
            # Batch innermost: pos/seg block indices are constant across the B
            # consecutive inner steps, so the pipeline skips re-fetching them.
            grid=(n_s, B),
            in_specs=[
                pl.BlockSpec((None, ts, D), lambda s, b: (b, s, 0)),  # x tile
                pl.BlockSpec((ts, D), lambda s, b: (s, 0)),           # pos rows
                pl.BlockSpec((2, D), lambda s, b: (0, 0)),            # seg table
            ],
            out_specs=pl.BlockSpec((None, ts, D), lambda s, b: (b, s, 0)),
        ),
        compiler_params=pltpu.CompilerParams(
            dimension_semantics=("parallel", "parallel")),
        cost_estimate=cost,
    )(x, pos, seg_table)
    return out


def _reference(x, pos_table, seg_table):
    B, S, D = x.shape
    seg_ids = (jnp.arange(S) > S // 2).astype(jnp.int32)
    return x + pos_table[:S][None] + seg_table[seg_ids][None]


if __name__ == "__main__":
    # Small, TPU-friendly shapes consistent with the module.
    B, S, D = 2, 16, 128
    max_pos_len, type_vocab_size = 64, 2

    key = jax.random.PRNGKey(0)
    kx, kp, ks = jax.random.split(key, 3)

    x = jax.random.normal(kx, (B, S, D), dtype=jnp.float32)
    pos_table = jax.random.normal(kp, (max_pos_len, D), dtype=jnp.float32)
    seg_table = jax.random.normal(ks, (type_vocab_size, D), dtype=jnp.float32)

    out = transformer_embeddings(x, pos_table, seg_table)
    out = jax.block_until_ready(out)

    ref = _reference(x, pos_table, seg_table)
    assert out.shape == (B, S, D)
    assert jnp.allclose(out, ref, atol=1e-6, rtol=1e-6)

    print("KERNEL_OK")
</pallas_src>

<mosaic_0001>
module attributes {stable_mosaic.version = 11 : i64} {
  func.func @_emb_kernel(%arg0: i32, %arg1: i32, %arg2: memref<1x16x128xf32, #tpu.memory_space<vmem>>, %arg3: memref<16x128xf32, #tpu.memory_space<vmem>>, %arg4: memref<2x128xf32, #tpu.memory_space<vmem>>, %arg5: memref<1x16x128xf32, #tpu.memory_space<vmem>>) attributes {dimension_semantics = [#tpu.dimension_semantics<parallel>, #tpu.dimension_semantics<parallel>], iteration_bounds = array<i64: 1, 2>, scalar_prefetch = 0 : i64, scratch_operands = 0 : i64, tpu.core_type = #tpu.core_type<tc>, window_params = [{transform_indices = @transform_0, window_bounds = array<i64: 1, 16, 128>}, {transform_indices = @transform_1, window_bounds = array<i64: 16, 128>}, {pipeline_mode = #tpu.pipeline_mode<synchronous>, transform_indices = @transform_2, window_bounds = array<i64: 2, 128>}, {transform_indices = @transform_3, window_bounds = array<i64: 1, 16, 128>}]} {
    %c16_i32 = arith.constant 16 : i32
    %0 = arith.muli %arg0, %c16_i32 : i32
    %1 = tpu.iota {dimensions = array<i32: 0>} : vector<16x1xi32>
    %2 = vector.broadcast %0 : i32 to vector<16x1xi32>
    %3 = arith.addi %2, %1 : vector<16x1xi32>
    %c8_i32 = arith.constant 8 : i32
    %4 = vector.broadcast %c8_i32 : i32 to vector<16x1xi32>
    %5 = arith.cmpi sgt, %3, %4 : vector<16x1xi32>
    %c0 = arith.constant 0 : index
    %c0_0 = arith.constant 0 : index
    %6 = vector.load %arg4[%c0, %c0_0] : memref<2x128xf32, #tpu.memory_space<vmem>>, vector<2x128xf32>
    %7 = vector.extract_strided_slice %6 {offsets = [1, 0], sizes = [1, 128], strides = [1, 1]} : vector<2x128xf32> to vector<1x128xf32>
    %8 = vector.extract_strided_slice %6 {offsets = [0, 0], sizes = [1, 128], strides = [1, 1]} : vector<2x128xf32> to vector<1x128xf32>
    %9 = vector.shape_cast %5 : vector<16x1xi1> to vector<16x1xi1>
    %10 = vector.broadcast %9 : vector<16x1xi1> to vector<16x128xi1>
    %11 = vector.shape_cast %7 : vector<1x128xf32> to vector<1x128xf32>
    %12 = vector.broadcast %11 : vector<1x128xf32> to vector<16x128xf32>
    %13 = vector.shape_cast %8 : vector<1x128xf32> to vector<1x128xf32>
    %14 = vector.broadcast %13 : vector<1x128xf32> to vector<16x128xf32>
    %15 = arith.select %10, %12, %14 : vector<16x128xi1>, vector<16x128xf32>
    %c0_1 = arith.constant 0 : index
    %c0_2 = arith.constant 0 : index
    %c0_3 = arith.constant 0 : index
    %16 = vector.load %arg2[%c0_1, %c0_2, %c0_3] : memref<1x16x128xf32, #tpu.memory_space<vmem>>, vector<1x16x128xf32>
    %17 = vector.shape_cast %16 : vector<1x16x128xf32> to vector<16x128xf32>
    %c0_4 = arith.constant 0 : index
    %c0_5 = arith.constant 0 : index
    %18 = vector.load %arg3[%c0_4, %c0_5] : memref<16x128xf32, #tpu.memory_space<vmem>>, vector<16x128xf32>
    %19 = arith.addf %17, %18 : vector<16x128xf32>
    %20 = arith.addf %19, %15 : vector<16x128xf32>
    %c0_6 = arith.constant 0 : index
    %c0_7 = arith.constant 0 : index
    %c0_8 = arith.constant 0 : index
    %21 = vector.load %arg5[%c0_6, %c0_7, %c0_8] : memref<1x16x128xf32, #tpu.memory_space<vmem>>, vector<1x16x128xf32>
    %22 = vector.shape_cast %21 : vector<1x16x128xf32> to vector<16x128xf32>
    %23 = vector.shape_cast %20 : vector<16x128xf32> to vector<1x16x128xf32>
    tpu.vector_store %arg5[%c0_6, %c0_7, %c0_8], %23 {strides = array<i32>} : memref<1x16x128xf32, #tpu.memory_space<vmem>>, vector<1x16x128xf32>,
    return
  }
  func.func @transform_0(%arg0: i32, %arg1: i32) -> (i32, i32, i32) {
    %c0_i32 = arith.constant 0 : i32
    %c0_i32_0 = arith.constant 0 : i32
    return %arg1, %arg0, %c0_i32 : i32, i32, i32
  }
  func.func @transform_1(%arg0: i32, %arg1: i32) -> (i32, i32) {
    %c0_i32 = arith.constant 0 : i32
    %c0_i32_0 = arith.constant 0 : i32
    return %arg0, %c0_i32 : i32, i32
  }
  func.func @transform_2(%arg0: i32, %arg1: i32) -> (i32, i32) {
    %c0_i32 = arith.constant 0 : i32
    %c0_i32_0 = arith.constant 0 : i32
    %c0_i32_1 = arith.constant 0 : i32
    return %c0_i32, %c0_i32_0 : i32, i32
  }
  func.func @transform_3(%arg0: i32, %arg1: i32) -> (i32, i32, i32) {
    %c0_i32 = arith.constant 0 : i32
    %c0_i32_0 = arith.constant 0 : i32
    return %arg1, %arg0, %c0_i32 : i32, i32, i32
  }
}

</mosaic_0001>

<bundles_post_ra>
// kernel: transformer_embeddings.1
= control target key start
LH: loop header
LB: loop body
LE: loop exit
PB: predicated region body
PF: predicated region fallthrough
CT: control target
= control target key end

     0   :  { %8 = vsyncpa [#allocation3], 0  ;;  %s889_s0 = inlined_call_operand.hbm [shape: f32[2,16,128], index: 0, kind: input, shape index: {}]   ;;  %s890_s1 = inlined_call_operand.hbm [shape: f32[64,128], index: 1, kind: input, shape index: {}]   ;;  %s891_s2 = inlined_call_operand.vmem [shape: f32[2,128], index: 2, kind: input, shape index: {}]   ;;  %s892_s3 = inlined_call_operand.hbm [shape: f32[2,16,128], index: 3, kind: output, shape index: {}]  }
   0x1   :  { %10 = vsyncpa [#allocation3 + $0x1], 0 }
   0x2   :  { %11 = vsyncpa [#allocation6], 0 }
   0x3   :  { %12 = vsyncpa [#allocation4], 0 }
   0x4   :  { %14 = vsyncpa [#allocation4 + $0x1], 0  ;;  %s651_s12 = smov 0   ;;  %s653_s13 = smov 0  }
   0x5   :  { %s655_s14 = smov 0   ;;  %s657_s15 = smov 0  }
   0x6   :  { %s659_s16 = smov 0   ;;  %s661_s17 = smov 0  }
   0x7 LB: > { %s382_s18 = sadd.s32 4294967295, %s622_s17   ;;  %s383_s19 = sadd.s32 4294967294, %s622_s17   ;;  %s622_s17 = sphi %s661_s17, %s20_s17   ;;  %s618_s16 = sphi %s659_s16, %s916_s16   ;;  %s614_s15 = sphi %s657_s15, %s915_s15   ;;  %s610_s14 = sphi %s655_s14, %s914_s14   ;;  %s606_s13 = sphi %s653_s13, %s913_s13   ;;  %s602_s12 = sphi %s651_s12, %s912_s12  }
   0x8   : > { %p54_p0 = scmp.ne.s32.totalorder %s606_s13, %s602_s12  ;;  %p685_p1 = scmp.eq.s32.totalorder %s382_s18, 0 }
   0x9   : > { %p689_p2 = scmp.eq.s32.totalorder %s382_s18, 1  ;;  %p133_p3 = scmp.eq.s32.totalorder %s383_s19, 1 }
   0xa   : > { %s897_s20 = scalar_select %p685_p1, 1, 0 }
   0xb   : > { %s898_s21 = scalar_select %p689_p2, 1, 0 }
   0xc   : > { %p695_p4 = por %p685_p1, %p54_p0  ;;  %p384_p5 = scmp.ge.s32.totalorder %s622_s17, 1 }
   0xd   : > { %p700_p6 = por %p133_p3, %p54_p0  ;;  %p140_p7 = scmp.lt.s32.totalorder %s622_s17, 3 }
   0xe   : > { %s899_s22 = scalar_select %p695_p4, 1, 0 }
   0xf   : > { %s900_s23 = scalar_select %p700_p6, 1, 0 }
  0x10   : > { %p705_p8 = pnand %p384_p5, %p140_p7  ;;  %s624_s25 = smov [#allocation5]  }
  0x11   : > { %s155_s26 = sshll.u32 %s624_s25, 4  ;;  %s29_s28 = sadd.s32 1, %s618_s16  ;;  %s709_s26 = int_to_ptr.vmem [resolvable:$true] %s155_s26 }
  0x12   : > { %s901_s24 = scalar_select %p705_p8, 1, 0 }
  0x13   : > { %p409_p9 = pneg %p705_p8  ;;  %s478_s4 = scalar_lea.hbm %s890_s1, 256 }
  0x14   : > { %p479_p12 = scmp.ne.s32.totalorder %s890_s1, %s478_s4  ;;  %s483_s9 = scalar_lea.hbm %s890_s1, 1024 }
  0x15   : > { %p716_p11 = pnand %p409_p9, %p685_p1  ;;  %p484_p5 = scmp.lt.u32.totalorder %s483_s9, %s478_s4 }
  0x16   : > { %p485_p7 = scmp.lt.u32.totalorder %s478_s4, %s890_s1 }
  0x17   : > { %p480_p13 = pneg %p716_p11 }
  0x18   : > { %p486_p9 = por %p485_p7, %p484_p5 }
  0x19   : > { %p481_p0 = pnand %p480_p13, %p479_p12 }
  0x1b   : > { %p482_p3 = pneg %p481_p0 }
  0x1d   : > { %p487_p10 = pnand %p486_p9, %p482_p3 }
  0x1f   : > { %490 = shalt.err (!%p487_p10)
}
  0x20   : > { %s491_s18 = scalar_lea.vmem %s709_s26, 256  ;;  %p499_p0 = scmp.lt.s32.totalorder %s709_s26, %s709_s26 }
  0x21   : > { %p492_p6 = scmp.ne.s32.totalorder %s709_s26, %s491_s18  ;;  %p500_p4 = scmp.lt.s32.totalorder %s491_s18, %s491_s18 }
  0x23   : > { %p494_p1 = pnand %p492_p6, %p480_p13  ;;  %p501_p8 = por %p500_p4, %p499_p0 }
  0x25   : > { %p495_p12 = pneg %p494_p1 }
  0x27   : > { %p502_p2 = pnand %p501_p8, %p495_p12 }
  0x29   : > { %505 = shalt.err (!%p502_p2)
}
  0x2a   : > { %s625_s19 = smov 128   ;;  %s626_s25 = smov 8  }
  0x2b   : > { %412 = dma.hbm_to_vmem [thread:$0]  (!%p716_p11), %s890_s1, 256, %s709_s26, [#allocation6], %s625_s19, %s625_s19, %s626_s25  }
  0x2c   : > { %p30_p1 = scmp.ge.s32.totalorder %s29_s28, 2  ;;  %s41_s4 = sadd.s32 1, %s610_s14 }
  0x2d   : > { %p48_p2 = scmp.ne.s32.totalorder %s610_s14, %s606_s13  ;;  %p49_p4 = scmp.eq.s32.totalorder %s622_s17, 0 }
  0x2e   : > { %s918_s28 = smov (%p30_p1, %s29_s28), 0  ;;  %p904_p8 = scmp.ne.s32.totalorder %s898_s21, 0 }
  0x2f   : > { %p754_p6 = por %p49_p4, %p48_p2  ;;  %s36_s6 = ssub.s32 %s618_s16, %s918_s28 }
  0x30   : > { %p760_p10 = por %p904_p8, %p48_p2  ;;  %p422_p13 = scmp.lt.s32.totalorder %s622_s17, 2 }
  0x31   : > { %p39_p11 = scmp.eq.s32.totalorder %s36_s6, 0  ;;  %s172_s26 = sand.u32 1, %s610_s14  }
  0x32   : > { %s387_s7 = sshll.u32 %s172_s26, 4  ;;  %s399_s9 = sshll.u32 %s618_s16, 8 }
  0x33   : > { %s769_s8 = scalar_select %p39_p11, %s610_s14, %s41_s4  }
  0x34   : > { %s775_s18 = scalar_lea.hbm %s889_s0, %s399_s9  ;;  %s176_s21 = scalar_lea.vmem [#allocation2], %s387_s7 }
  0x35   : > { %s185_s29 = sshll.u32 %s176_s21, 4  ;;  %p781_p3 = pnand %p422_p13, %p754_p6  ;;  %s777_s29 = int_to_ptr.vmem [resolvable:$true] %s185_s29 }
  0x36   : > { %s785_s4 = scalar_lea.sflag [#allocation3], %s172_s26  ;;  %s506_s6 = scalar_lea.hbm %s775_s18, 256 }
  0x37   : > { %p507_p5 = scmp.ne.s32.totalorder %s775_s18, %s506_s6  ;;  %p508_p7 = pneg %p781_p3 }
  0x38   : > { %s511_s5 = scalar_lea.hbm %s889_s0, 512  ;;  %p512_p0 = scmp.lt.u32.totalorder %s775_s18, %s889_s0 }
  0x39   : > { %p509_p9 = pnand %p508_p7, %p507_p5  ;;  %p513_p1 = scmp.lt.u32.totalorder %s511_s5, %s506_s6 }
  0x3a   : > { %p515_p4 = scmp.lt.u32.totalorder %s506_s6, %s775_s18 }
  0x3b   : > { %p510_p12 = pneg %p509_p9  ;;  %p514_p2 = por %p513_p1, %p512_p0 }
  0x3d   : > { %p516_p6 = por %p515_p4, %p514_p2 }
  0x3f   : > { %p517_p8 = pnand %p516_p6, %p510_p12 }
  0x41   : > { %520 = shalt.err (!%p517_p8)
}
  0x42   : > { %s521_s26 = scalar_lea.vmem %s777_s29, 256  ;;  %s627_s21 = smov [#allocation2]  }
  0x43   : > { %p522_p13 = scmp.ne.s32.totalorder %s777_s29, %s521_s26  ;;  %s526_s7 = sshll.u32 %s627_s21, 4  ;;  %s527_s7 = int_to_ptr.vmem [resolvable:$false] %s526_s7 }
  0x44   : > { %s528_s9 = scalar_lea.vmem %s527_s7, 512  ;;  %p529_p9 = scmp.lt.s32.totalorder %s777_s29, %s527_s7 }
  0x45   : > { %p524_p11 = pnand %p522_p13, %p508_p7  ;;  %p530_p0 = scmp.lt.s32.totalorder %s528_s9, %s521_s26 }
  0x47   : > { %p525_p5 = pneg %p524_p11  ;;  %p531_p1 = por %p530_p0, %p529_p9 }
  0x49   : > { %p532_p2 = pnand %p531_p1, %p525_p5 }
  0x4b   : > { %535 = shalt.err (!%p532_p2)
}
  0x4c   : > { %416 = dma.hbm_to_vmem [thread:$0]  (!%p781_p3), %s775_s18, 256, %s777_s29, %s785_s4, %s625_s19, %s625_s19, %s626_s25  }
  0x4d   : > { %p907_p7 = scmp.ne.s32.totalorder %s901_s24, 0 }
  0x4e   : > { %s819_s6 = sand.u32 (!%p907_p7), 1, %s606_s13   ;;  %p908_p12 = scmp.ne.s32.totalorder (!%p907_p7), %s899_s22, 0 }
  0x4f   : > { %197 = sbr.rel (%p907_p7) target bundleno = 116 (0x74), region = 32  ;;  %s391_s5 = sshll.u32 (!%p907_p7), %s819_s6, 4 }
  0x50   : > { %s200_s10 = scalar_lea.sflag (!%p907_p7), [#allocation3], %s819_s6  ;;  %s203_s11 = scalar_lea.vmem (!%p907_p7), [#allocation2], %s391_s5 }
  0x56   : > { %589 = dma.done.wait (%p908_p12), %s200_s10, 256  }
  0x57   : > { %591 = vsyncadd (%p908_p12), %s200_s10, 4294967040  ;;  %p909_p4 = scmp.ne.s32.totalorder %s897_s20, 0 }
  0x59   : > { %593 = dma.done.wait (%p909_p4), [#allocation6], 256  }
  0x5a   : > { %595 = vsyncadd (%p909_p4), [#allocation6], 4294967040  ;;  %v234_v0 = vlaneseq  ;;  %s229_s24 = scalar_lea.vmem [#allocation7], %s391_s5  ;;  %v242_v5 = vld [vmem:[%s891_s2] sm:$0x3]  ;;  %s400_s22 = sshll.u32 %s614_s15, 8 }
  0x5b   : > { %s283_s19 = sshll.u32 %s229_s24, 4  ;;  %v257_v6 = vld [vmem:[%s203_s11] sm:$0xff]  ;;  %v258_v11 = vld [vmem:[%s203_s11 + $0x8] sm:$0xff]  ;;  %s840_s30 = scalar_lea.hbm %s892_s3, %s400_s22  ;;  %s835_s19 = int_to_ptr.vmem [resolvable:$true] %s283_s19 }
  0x5c   : > { %v235_v1 = vshrl.u32 %v234_v0, 7  ;;  %v259_v7 = vld [vmem:[#allocation5] sm:$0xff]  ;;  %v260_v12 = vld [vmem:[#allocation5 + $0x8] sm:$0xff]  ;;  %s268_s15 = scalar_lea.sflag [#allocation4], %s819_s6  ;;  %s536_s4 = scalar_lea.vmem %s835_s19, 256 }
  0x5d   : > { %v261_v10 = vadd.f32 %v259_v7, %v257_v6  ;;  %v262_v13 = vadd.f32 %v260_v12, %v258_v11  ;;  %p537_p3 = scmp.ne.s32.totalorder %s835_s19, %s536_s4  ;;  %s628_s26 = smov [#allocation7]  }
  0x5e   : > { %v249_v2 = vsub.s32 1, %v235_v1  ;;  %v253_v3 = vsub.s32 0, %v235_v1  ;;  %v236_v4 = vadd.s32 8, %v235_v1  ;;  %s540_s21 = sshll.u32 %s628_s26, 4  ;;  %s541_s21 = int_to_ptr.vmem [resolvable:$false] %s540_s21 }
  0x5f   : > { %p538_p6 = pnand %p537_p3, %p760_p10  ;;  %s542_s7 = scalar_lea.vmem %s541_s21, 512 }
  0x60   : > { %vm241_vm0 = vcmp.gt.s32.totalorder %v236_v4, 8  ;;  %v250_v8 = vrot.slane %v242_v5, %v249_v2  ;;  %v254_v9 = vrot.slane %v242_v5, %v253_v3  ;;  %p543_p13 = scmp.lt.s32.totalorder %s835_s19, %s541_s21  ;;  %p544_p11 = scmp.lt.s32.totalorder %s542_s7, %s536_s4 }
  0x61   : > { %p539_p8 = pneg %p538_p6 }
  0x62   : > { %v263_v14 = vadd.f32 %v261_v10, %v254_v9  ;;  %v256_v15 = vsel %vm241_vm0, %v250_v8, %v254_v9  ;;  %p545_p5 = por %p544_p11, %p543_p13 }
  0x63   : > { %v264_v16 = vadd.f32 %v262_v13, %v256_v15 }
  0x64   : > { %265 = vst [vmem:[%s229_s24] sm:$0xff] %v263_v14  ;;  %p546_p9 = pnand %p545_p5, %p539_p8 }
  0x65   : > { %266 = vst [vmem:[%s229_s24 + $0x8] sm:$0xff] %v264_v16 }
  0x66   : > { %549 = shalt.err (!%p546_p9)
}
  0x67   : > { %s550_s9 = scalar_lea.hbm %s840_s30, 256  ;;  %s554_s11 = scalar_lea.hbm %s892_s3, 512 }
  0x68   : > { %p551_p0 = scmp.ne.s32.totalorder %s840_s30, %s550_s9  ;;  %p555_p7 = scmp.lt.u32.totalorder %s840_s30, %s892_s3 }
  0x69   : > { %p556_p12 = scmp.lt.u32.totalorder %s554_s11, %s550_s9  ;;  %p558_p3 = scmp.lt.u32.totalorder %s550_s9, %s840_s30 }
  0x6a   : > { %p552_p1 = pnand %p551_p0, %p760_p10 }
  0x6b   : > { %p557_p4 = por %p556_p12, %p555_p7 }
  0x6c   : > { %p553_p2 = pneg %p552_p1 }
  0x6d   : > { %p559_p6 = por %p558_p3, %p557_p4 }
  0x6f   : > { %p560_p8 = pnand %p559_p6, %p553_p2 }
  0x71   : > { %563 = shalt.err (!%p560_p8)
}
  0x72   : > { %s629_s18 = smov 128   ;;  %s630_s22 = smov 8  }
  0x73   : > { %407 = dma.vmem_to_hbm [thread:$0]  (%p760_p10), %s835_s19, 256, %s840_s30, %s268_s15, %s629_s18, %s629_s18, %s630_s22  }
  0x74 PF: > { %s298_s20 = sand.u32 1, %s602_s12   ;;  %p910_p13 = scmp.ne.s32.totalorder %s900_s23, 0 }
  0x75   : > { %p911_p11 = scmp.ge.s32.totalorder %s622_s17, 2  ;;  %s299_s29 = scalar_lea.sflag [#allocation4], %s298_s20 }
  0x77   : > { %p418_p5 = pnand %p911_p11, %p910_p13 }
  0x79   : > { %597 = dma.done.wait (!%p418_p5), %s299_s29, 256  }
  0x7a   : > { %599 = vsyncadd (!%p418_p5), %s299_s29, 4294967040  ;;  %s20_s17 = sadd.s32 1, %s622_s17   ;;  %s912_s12 = smov %s606_s13 }
  0x7b   : > { %p17_p9 = scmp.ge.s32.totalorder %s20_s17, 4   ;;  %s913_s13 = smov %s610_s14 }
  0x7c   : > { %s914_s14 = smov %s769_s8  ;;  %s915_s15 = smov %s618_s16 }
  0x7d   : > { %s916_s16 = smov %s918_s28  ;;  %19 = sbr.rel (!%p17_p9) target bundleno = 7 (0x7), region = 82 }
  0x84   :  { %304 = vsyncpa [#allocation3], 1 }
  0x85   :  { %306 = vsyncpa [#allocation3 + $0x1], 1 }
  0x86   :  { %307 = vsyncpa [#allocation6], 1 }
  0x87   :  { %308 = vsyncpa [#allocation4], 1 }
  0x88   :  { %310 = vsyncpa [#allocation4 + $0x1], 1 }

</bundles_post_ra>
